<compile_context>
chip_gen: v6e
topology: v6e:2x2x1
jax: 0.10.0
libtpu: 0.0.40
codegen_flags: <defaults>
</compile_context>

<pallas_src>
import math

import jax
import jax.numpy as jnp
from jax.experimental import pallas as pl
from jax.experimental.pallas import tpu as pltpu


# ----------------------------- config (small, synthetic) -----------------------------
B = 2            # batch
S = 8            # sequence length
D = 32           # d_model
H = 4            # num_heads
DK = 8           # d_kv (per-head dim)
INNER = H * DK   # inner_dim
NUM_BUCKETS = 32
MAX_DISTANCE = 128
LN_EPS = 1e-6
IS_DECODER = False


# ----------------------------- relative position bias (glue, plain JAX) -----------------------------
def _relative_position_bucket(relative_position, num_buckets=NUM_BUCKETS,
                              max_distance=MAX_DISTANCE, bidirectional=not IS_DECODER):
    relative_buckets = jnp.zeros_like(relative_position)
    if bidirectional:
        num_buckets //= 2
        relative_buckets = relative_buckets + (relative_position > 0).astype(jnp.int32) * num_buckets
        relative_position = jnp.abs(relative_position)
    else:
        relative_position = -jnp.minimum(relative_position, jnp.zeros_like(relative_position))
    max_exact = num_buckets // 2
    is_small = relative_position < max_exact
    # clamp avoids log(0) = -inf flowing through the (discarded) large-bucket branch
    safe_rp = jnp.maximum(relative_position, 1).astype(jnp.float32)
    log_ratio = jnp.log(safe_rp / max_exact) / math.log(max_distance / max_exact)
    log_ratio = log_ratio * (num_buckets - max_exact)
    rel_if_large = max_exact + log_ratio.astype(jnp.int32)
    rel_if_large = jnp.minimum(rel_if_large, num_buckets - 1)
    relative_buckets = relative_buckets + jnp.where(is_small, relative_position, rel_if_large)
    return relative_buckets


def compute_position_bias(rel_attn_bias_table, query_length, key_length):
    # rel_attn_bias_table: (NUM_BUCKETS, H) embedding weight
    context_position = jnp.arange(query_length, dtype=jnp.int32)[:, None]
    memory_position = jnp.arange(key_length, dtype=jnp.int32)[None, :]
    relative_position = memory_position - context_position                  # (Q, K)
    buckets = _relative_position_bucket(relative_position)                  # (Q, K)
    values = rel_attn_bias_table[buckets]                                   # (Q, K, H)
    return jnp.transpose(values, (2, 0, 1))                                 # (H, Q, K)


# ----------------------------- Pallas kernel (hot path, whole batch in one step) -----------------------------
def umt5_self_attn_kernel(x_ref, lnw_ref, wqkv_ref, wo_ref, bias_ref,
                          out_ref, attn_ref):
    BS = B * S
    x = x_ref[...].reshape(BS, D).astype(jnp.float32)            # (B*S, D): merge leading dim only

    # --- UMT5LayerNorm (RMS-style, no mean subtraction) ---
    var = jnp.mean(x * x, axis=-1, keepdims=True)                # (BS, 1)
    normed = x * jax.lax.rsqrt(var + LN_EPS) * lnw_ref[...]      # (BS, D)

    # --- fused head-major QKV projection: one batched MXU contraction ---
    # wqkv_ref: (3H, D, DK); broadcast normed over the (cheap) leading 3H axis
    nb = jnp.broadcast_to(normed[None], (3 * H, BS, D))
    qkv = jax.lax.dot_general(
        nb, wqkv_ref[...],
        dimension_numbers=(((2,), (1,)), ((0,), (0,))),
        preferred_element_type=jnp.float32)                      # (3H, BS, DK)

    # leading-axis split (no lane slicing) -> per-(head, batch) tensors (H*B, S, DK)
    q = qkv[0 * H:1 * H].reshape(H * B, S, DK)
    k = qkv[1 * H:2 * H].reshape(H * B, S, DK)
    v = qkv[2 * H:3 * H].reshape(H * B, S, DK)

    # --- attention scores, batched over (head, batch) ---
    scores = jnp.einsum('nqc,nkc->nqk', q, k,
                        preferred_element_type=jnp.float32)      # (H*B, S, S)
    scores = scores.reshape(H, B, S, S) + bias_ref[...][:, None, :, :]

    # --- softmax (dropout is identity at inference) ---
    scores = scores - jnp.max(scores, axis=-1, keepdims=True)
    e = jnp.exp(scores)
    attn = e * pl.reciprocal(jnp.sum(e, axis=-1, keepdims=True), approx=True)  # (H, B, S, S)

    # attention-weights output: one full-block store in (B, H, S, S) order
    attn_ref[...] = jnp.swapaxes(attn, 0, 1)

    # --- context + output projection (head-batched; no lane concatenation) ---
    ctx = jnp.einsum('nqk,nkc->nqc', attn.reshape(H * B, S, S), v,
                     preferred_element_type=jnp.float32)         # (H*B, S, DK)
    ctx = ctx.reshape(H, BS, DK)                                 # (H, B*S, DK)
    partial = jnp.einsum('hnc,hcd->hnd', ctx, wo_ref[...],
                         preferred_element_type=jnp.float32)     # (H, B*S, D)
    attn_out = jnp.sum(partial, axis=0)                          # (B*S, D): sum over heads (leading axis)

    # --- residual ---
    out_ref[...] = (x + attn_out).reshape(B, S, D)


def umt5_layer_self_attention(x, ln_weight, wq, wk, wv, wo, rel_attn_bias_table):
    """x: (B, S, D). Linear weights stored (in, out). Returns (hidden, attn_weights)."""
    bias = compute_position_bias(rel_attn_bias_table, S, S)      # (H, S, S)
    ln_w2d = ln_weight.reshape(1, D)

    # head-major fused QKV weight: (3*H, D, DK) -- rows [0:H)=q heads, [H:2H)=k, [2H:3H)=v
    wqkv = jnp.concatenate(
        [w.reshape(D, H, DK).transpose(1, 0, 2) for w in (wq, wk, wv)], axis=0)
    # head-major output projection: (H, DK, D)
    wo_h = wo.reshape(H, DK, D)

    out_shapes = (
        jax.ShapeDtypeStruct((B, S, D), jnp.float32),
        jax.ShapeDtypeStruct((B, H, S, S), jnp.float32),
    )
    return pl.pallas_call(
        umt5_self_attn_kernel,
        out_shape=out_shapes,
        grid=(1,),                                               # whole batch in one step
        in_specs=[
            pl.BlockSpec((B, S, D), lambda i: (0, 0, 0)),        # x
            pl.BlockSpec((1, D), lambda i: (0, 0)),              # ln weight
            pl.BlockSpec((3 * H, D, DK), lambda i: (0, 0, 0)),   # fused head-major Wqkv
            pl.BlockSpec((H, DK, D), lambda i: (0, 0, 0)),       # head-major Wo
            pl.BlockSpec((H, S, S), lambda i: (0, 0, 0)),        # position bias
        ],
        out_specs=(
            pl.BlockSpec((B, S, D), lambda i: (0, 0, 0)),        # hidden_states out
            pl.BlockSpec((B, H, S, S), lambda i: (0, 0, 0, 0)),  # attn weights out
        ),
        compiler_params=pltpu.CompilerParams(dimension_semantics=("arbitrary",)),
    )(x, ln_w2d, wqkv, wo_h, bias)


# ----------------------------- pure-JAX reference for verification -----------------------------
def reference(x, ln_weight, wq, wk, wv, wo, rel_attn_bias_table):
    var = jnp.mean(x.astype(jnp.float32) ** 2, axis=-1, keepdims=True)
    normed = x * jax.lax.rsqrt(var + LN_EPS) * ln_weight
    q = (normed @ wq).reshape(B, S, H, DK).transpose(0, 2, 1, 3)
    k = (normed @ wk).reshape(B, S, H, DK).transpose(0, 2, 1, 3)
    v = (normed @ wv).reshape(B, S, H, DK).transpose(0, 2, 1, 3)
    scores = jnp.einsum("bhqd,bhkd->bhqk", q, k)
    bias = compute_position_bias(rel_attn_bias_table, S, S)[None]
    scores = scores + bias
    attn = jax.nn.softmax(scores.astype(jnp.float32), axis=-1)
    ctx = jnp.einsum("bhqk,bhkd->bhqd", attn, v)
    ctx = ctx.transpose(0, 2, 1, 3).reshape(B, S, INNER)
    out = x + ctx @ wo
    return out, attn


if __name__ == "__main__":
    key = jax.random.PRNGKey(0)
    k_x, k_q, k_k, k_v, k_o, k_b, k_ln = jax.random.split(key, 7)

    x = jax.random.normal(k_x, (B, S, D), dtype=jnp.float32)
    # Linear weights stored as (in, out) == W.T of nn.Linear's (out, in).
    wq = jax.random.normal(k_q, (D, INNER), dtype=jnp.float32) * 0.05
    wk = jax.random.normal(k_k, (D, INNER), dtype=jnp.float32) * 0.05
    wv = jax.random.normal(k_v, (D, INNER), dtype=jnp.float32) * 0.05
    wo = jax.random.normal(k_o, (INNER, D), dtype=jnp.float32) * 0.05
    rel_bias_table = jax.random.normal(k_b, (NUM_BUCKETS, H), dtype=jnp.float32) * 0.1
    ln_weight = jnp.ones((D,), dtype=jnp.float32) + 0.01 * jax.random.normal(k_ln, (D,))

    out, attn = umt5_layer_self_attention(x, ln_weight, wq, wk, wv, wo, rel_bias_table)
    jax.block_until_ready(out)
    jax.block_until_ready(attn)

    ref_out, ref_attn = reference(x, ln_weight, wq, wk, wv, wo, rel_bias_table)
    # tolerances loosened for pl.reciprocal(approx=True) in the softmax denominator
    assert jnp.allclose(out, ref_out, atol=5e-3, rtol=1e-3), "hidden mismatch"
    assert jnp.allclose(attn, ref_attn, atol=5e-3, rtol=1e-3), "attn mismatch"

    print("KERNEL_OK")
</pallas_src>

<mosaic_0001>
module attributes {stable_mosaic.version = 11 : i64} {
  func.func @umt5_self_attn_kernel(%arg0: i32, %arg1: memref<2x8x32xf32, #tpu.memory_space<vmem>>, %arg2: memref<1x32xf32, #tpu.memory_space<vmem>>, %arg3: memref<12x32x8xf32, #tpu.memory_space<vmem>>, %arg4: memref<4x8x32xf32, #tpu.memory_space<vmem>>, %arg5: memref<4x8x8xf32, #tpu.memory_space<vmem>>, %arg6: memref<2x8x32xf32, #tpu.memory_space<vmem>>, %arg7: memref<2x4x8x8xf32, #tpu.memory_space<vmem>>) attributes {dimension_semantics = [#tpu.dimension_semantics<arbitrary>], iteration_bounds = array<i64: 1>, scalar_prefetch = 0 : i64, scratch_operands = 0 : i64, tpu.core_type = #tpu.core_type<tc>, window_params = [{pipeline_mode = #tpu.pipeline_mode<synchronous>, transform_indices = @transform_0, window_bounds = array<i64: 2, 8, 32>}, {pipeline_mode = #tpu.pipeline_mode<synchronous>, transform_indices = @transform_1, window_bounds = array<i64: 1, 32>}, {pipeline_mode = #tpu.pipeline_mode<synchronous>, transform_indices = @transform_2, window_bounds = array<i64: 12, 32, 8>}, {pipeline_mode = #tpu.pipeline_mode<synchronous>, transform_indices = @transform_3, window_bounds = array<i64: 4, 8, 32>}, {pipeline_mode = #tpu.pipeline_mode<synchronous>, transform_indices = @transform_4, window_bounds = array<i64: 4, 8, 8>}, {pipeline_mode = #tpu.pipeline_mode<synchronous>, transform_indices = @transform_5, window_bounds = array<i64: 2, 8, 32>}, {pipeline_mode = #tpu.pipeline_mode<synchronous>, transform_indices = @transform_6, window_bounds = array<i64: 2, 4, 8, 8>}]} {
    %c0 = arith.constant 0 : index
    %c0_0 = arith.constant 0 : index
    %c0_1 = arith.constant 0 : index
    %0 = vector.load %arg1[%c0, %c0_0, %c0_1] : memref<2x8x32xf32, #tpu.memory_space<vmem>>, vector<2x8x32xf32>
    %1 = vector.shape_cast %0 : vector<2x8x32xf32> to vector<16x32xf32>
    %2 = arith.mulf %1, %1 : vector<16x32xf32>
    %cst = arith.constant dense<0.000000e+00> : vector<16xf32>
    %3 = vector.multi_reduction <add>, %2, %cst [1] : vector<16x32xf32> to vector<16xf32>
    %4 = vector.shape_cast %3 : vector<16xf32> to vector<16x1xf32>
    %cst_2 = arith.constant 3.200000e+01 : f32
    %5 = vector.broadcast %cst_2 : f32 to vector<16x1xf32>
    %6 = arith.divf %4, %5 : vector<16x1xf32>
    %cst_3 = arith.constant 9.99999997E-7 : f32
    %7 = vector.broadcast %cst_3 : f32 to vector<16x1xf32>
    %8 = arith.addf %6, %7 : vector<16x1xf32>
    %9 = math.rsqrt %8 : vector<16x1xf32>
    %10 = vector.broadcast %9 : vector<16x1xf32> to vector<16x32xf32>
    %11 = arith.mulf %1, %10 : vector<16x32xf32>
    %c0_4 = arith.constant 0 : index
    %c0_5 = arith.constant 0 : index
    %12 = vector.load %arg2[%c0_4, %c0_5] : memref<1x32xf32, #tpu.memory_space<vmem>>, vector<1x32xf32>
    %13 = vector.broadcast %12 : vector<1x32xf32> to vector<16x32xf32>
    %14 = arith.mulf %11, %13 : vector<16x32xf32>
    %15 = vector.shape_cast %14 : vector<16x32xf32> to vector<1x16x32xf32>
    %16 = vector.shape_cast %15 : vector<1x16x32xf32> to vector<1x16x32xf32>
    %17 = vector.broadcast %16 : vector<1x16x32xf32> to vector<12x16x32xf32>
    %c0_6 = arith.constant 0 : index
    %c0_7 = arith.constant 0 : index
    %c0_8 = arith.constant 0 : index
    %18 = vector.load %arg3[%c0_6, %c0_7, %c0_8] : memref<12x32x8xf32, #tpu.memory_space<vmem>>, vector<12x32x8xf32>
    %cst_9 = arith.constant dense<0.000000e+00> : vector<12x16x8xf32>
    %19 = tpu.matmul %17, %18, %cst_9 {dimension_numbers = #tpu.dot_dimension_numbers<[2], [1], [1], [2], [0, 0, 0, 1, 1, 2], [0], [0]>} : vector<12x16x32xf32>, vector<12x32x8xf32>, vector<12x16x8xf32> -> vector<12x16x8xf32>
    %20 = vector.extract_strided_slice %19 {offsets = [0, 0, 0], sizes = [4, 16, 8], strides = [1, 1, 1]} : vector<12x16x8xf32> to vector<4x16x8xf32>
    %21 = vector.shape_cast %20 : vector<4x16x8xf32> to vector<8x8x8xf32>
    %22 = vector.extract_strided_slice %19 {offsets = [4, 0, 0], sizes = [4, 16, 8], strides = [1, 1, 1]} : vector<12x16x8xf32> to vector<4x16x8xf32>
    %23 = vector.shape_cast %22 : vector<4x16x8xf32> to vector<8x8x8xf32>
    %24 = vector.extract_strided_slice %19 {offsets = [8, 0, 0], sizes = [4, 16, 8], strides = [1, 1, 1]} : vector<12x16x8xf32> to vector<4x16x8xf32>
    %25 = vector.shape_cast %24 : vector<4x16x8xf32> to vector<8x8x8xf32>
    "tpu.trace_start"() <{level = 10 : i32, message = "nqc,nkc->nqk"}> : () -> ()
    %cst_10 = arith.constant dense<0.000000e+00> : vector<8x8x8xf32>
    %26 = tpu.matmul %21, %23, %cst_10 {dimension_numbers = #tpu.dot_dimension_numbers<[2], [2], [1], [1], [0, 0, 0, 1, 1, 1], [0], [0]>} : vector<8x8x8xf32>, vector<8x8x8xf32>, vector<8x8x8xf32> -> vector<8x8x8xf32>
    "tpu.trace_stop"() : () -> ()
    %27 = vector.shape_cast %26 : vector<8x8x8xf32> to vector<4x2x8x8xf32>
    %c0_11 = arith.constant 0 : index
    %c0_12 = arith.constant 0 : index
    %c0_13 = arith.constant 0 : index
    %28 = vector.load %arg5[%c0_11, %c0_12, %c0_13] : memref<4x8x8xf32, #tpu.memory_space<vmem>>, vector<4x8x8xf32>
    %29 = vector.shape_cast %28 : vector<4x8x8xf32> to vector<4x1x8x8xf32>
    %30 = vector.broadcast %29 : vector<4x1x8x8xf32> to vector<4x2x8x8xf32>
    %31 = arith.addf %27, %30 : vector<4x2x8x8xf32>
    %cst_14 = arith.constant dense<0xFF800000> : vector<4x2x8xf32>
    %32 = vector.multi_reduction <maximumf>, %31, %cst_14 [3] : vector<4x2x8x8xf32> to vector<4x2x8xf32>
    %33 = vector.shape_cast %32 : vector<4x2x8xf32> to vector<4x2x8x1xf32>
    %34 = vector.broadcast %33 : vector<4x2x8x1xf32> to vector<4x2x8x8xf32>
    %35 = arith.subf %31, %34 : vector<4x2x8x8xf32>
    %36 = math.exp %35 : vector<4x2x8x8xf32>
    %cst_15 = arith.constant dense<0.000000e+00> : vector<4x2x8xf32>
    %37 = vector.multi_reduction <add>, %36, %cst_15 [3] : vector<4x2x8x8xf32> to vector<4x2x8xf32>
    %38 = vector.shape_cast %37 : vector<4x2x8xf32> to vector<4x2x8x1xf32>
    %39 = tpu.reciprocal %38 {approx = true} : vector<4x2x8x1xf32> -> vector<4x2x8x1xf32>
    %40 = vector.broadcast %39 : vector<4x2x8x1xf32> to vector<4x2x8x8xf32>
    %41 = arith.mulf %36, %40 : vector<4x2x8x8xf32>
    %42 = tpu.transpose %41, [1, 0, 2, 3] : vector<4x2x8x8xf32> -> vector<2x4x8x8xf32>
    %c0_16 = arith.constant 0 : index
    %c0_17 = arith.constant 0 : index
    %c0_18 = arith.constant 0 : index
    %c0_19 = arith.constant 0 : index
    %43 = vector.load %arg7[%c0_16, %c0_17, %c0_18, %c0_19] : memref<2x4x8x8xf32, #tpu.memory_space<vmem>>, vector<2x4x8x8xf32>
    tpu.vector_store %arg7[%c0_16, %c0_17, %c0_18, %c0_19], %42 {strides = array<i32>} : memref<2x4x8x8xf32, #tpu.memory_space<vmem>>, vector<2x4x8x8xf32>,
    %44 = vector.shape_cast %41 : vector<4x2x8x8xf32> to vector<8x8x8xf32>
    "tpu.trace_start"() <{level = 10 : i32, message = "nqk,nkc->nqc"}> : () -> ()
    %cst_20 = arith.constant dense<0.000000e+00> : vector<8x8x8xf32>
    %45 = tpu.matmul %44, %25, %cst_20 {dimension_numbers = #tpu.dot_dimension_numbers<[2], [1], [1], [2], [0, 0, 0, 1, 1, 2], [0], [0]>} : vector<8x8x8xf32>, vector<8x8x8xf32>, vector<8x8x8xf32> -> vector<8x8x8xf32>
    "tpu.trace_stop"() : () -> ()
    %46 = vector.shape_cast %45 : vector<8x8x8xf32> to vector<4x16x8xf32>
    %c0_21 = arith.constant 0 : index
    %c0_22 = arith.constant 0 : index
    %c0_23 = arith.constant 0 : index
    %47 = vector.load %arg4[%c0_21, %c0_22, %c0_23] : memref<4x8x32xf32, #tpu.memory_space<vmem>>, vector<4x8x32xf32>
    "tpu.trace_start"() <{level = 10 : i32, message = "hnc,hcd->hnd"}> : () -> ()
    %cst_24 = arith.constant dense<0.000000e+00> : vector<4x16x32xf32>
    %48 = tpu.matmul %46, %47, %cst_24 {dimension_numbers = #tpu.dot_dimension_numbers<[2], [1], [1], [2], [0, 0, 0, 1, 1, 2], [0], [0]>} : vector<4x16x8xf32>, vector<4x8x32xf32>, vector<4x16x32xf32> -> vector<4x16x32xf32>
    "tpu.trace_stop"() : () -> ()
    %cst_25 = arith.constant dense<0.000000e+00> : vector<16x32xf32>
    %49 = vector.multi_reduction <add>, %48, %cst_25 [0] : vector<4x16x32xf32> to vector<16x32xf32>
    %50 = arith.addf %1, %49 : vector<16x32xf32>
    %51 = vector.shape_cast %50 : vector<16x32xf32> to vector<2x8x32xf32>
    %c0_26 = arith.constant 0 : index
    %c0_27 = arith.constant 0 : index
    %c0_28 = arith.constant 0 : index
    %52 = vector.load %arg6[%c0_26, %c0_27, %c0_28] : memref<2x8x32xf32, #tpu.memory_space<vmem>>, vector<2x8x32xf32>
    tpu.vector_store %arg6[%c0_26, %c0_27, %c0_28], %51 {strides = array<i32>} : memref<2x8x32xf32, #tpu.memory_space<vmem>>, vector<2x8x32xf32>,
    return
  }
  func.func @transform_0(%arg0: i32) -> (i32, i32, i32) {
    %c0_i32 = arith.constant 0 : i32
    %c0_i32_0 = arith.constant 0 : i32
    %c0_i32_1 = arith.constant 0 : i32
    %c0_i32_2 = arith.constant 0 : i32
    return %c0_i32, %c0_i32_0, %c0_i32_1 : i32, i32, i32
  }
  func.func @transform_1(%arg0: i32) -> (i32, i32) {
    %c0_i32 = arith.constant 0 : i32
    %c0_i32_0 = arith.constant 0 : i32
    %c0_i32_1 = arith.constant 0 : i32
    return %c0_i32, %c0_i32_0 : i32, i32
  }
  func.func @transform_2(%arg0: i32) -> (i32, i32, i32) {
    %c0_i32 = arith.constant 0 : i32
    %c0_i32_0 = arith.constant 0 : i32
    %c0_i32_1 = arith.constant 0 : i32
    %c0_i32_2 = arith.constant 0 : i32
    return %c0_i32, %c0_i32_0, %c0_i32_1 : i32, i32, i32
  }
  func.func @transform_3(%arg0: i32) -> (i32, i32, i32) {
    %c0_i32 = arith.constant 0 : i32
    %c0_i32_0 = arith.constant 0 : i32
    %c0_i32_1 = arith.constant 0 : i32
    %c0_i32_2 = arith.constant 0 : i32
    return %c0_i32, %c0_i32_0, %c0_i32_1 : i32, i32, i32
  }
  func.func @transform_4(%arg0: i32) -> (i32, i32, i32) {
    %c0_i32 = arith.constant 0 : i32
    %c0_i32_0 = arith.constant 0 : i32
    %c0_i32_1 = arith.constant 0 : i32
    %c0_i32_2 = arith.constant 0 : i32
    return %c0_i32, %c0_i32_0, %c0_i32_1 : i32, i32, i32
  }
  func.func @transform_5(%arg0: i32) -> (i32, i32, i32) {
    %c0_i32 = arith.constant 0 : i32
    %c0_i32_0 = arith.constant 0 : i32
    %c0_i32_1 = arith.constant 0 : i32
    %c0_i32_2 = arith.constant 0 : i32
    return %c0_i32, %c0_i32_0, %c0_i32_1 : i32, i32, i32
  }
  func.func @transform_6(%arg0: i32) -> (i32, i32, i32, i32) {
    %c0_i32 = arith.constant 0 : i32
    %c0_i32_0 = arith.constant 0 : i32
    %c0_i32_1 = arith.constant 0 : i32
    %c0_i32_2 = arith.constant 0 : i32
    %c0_i32_3 = arith.constant 0 : i32
    return %c0_i32, %c0_i32_0, %c0_i32_1, %c0_i32_2 : i32, i32, i32, i32
  }
}

</mosaic_0001>

<bundles_post_ra>
// kernel: tpu_custom_call.1
= control target key start
LH: loop header
LB: loop body
LE: loop exit
PB: predicated region body
PF: predicated region fallthrough
CT: control target
= control target key end

     0   :  { %12 = vsyncpa [#allocation3], 0  ;;  %vm28_vm0 = vcmask 261120   ;;  %s3609_s0 = inlined_call_operand.vmem [shape: f32[2,8,32], index: 0, kind: input, shape index: {}]   ;;  %s3610_s1 = inlined_call_operand.vmem [shape: f32[1,32], index: 1, kind: input, shape index: {}]   ;;  %s3611_s2 = inlined_call_operand.vmem [shape: f32[12,32,8], index: 2, kind: input, shape index: {}]   ;;  %s3612_s3 = inlined_call_operand.vmem [shape: f32[4,8,32], index: 3, kind: input, shape index: {}]   ;;  %s3613_s4 = inlined_call_operand.vmem [shape: f32[4,8,8], index: 4, kind: input, shape index: {}]   ;;  %s3614_s5 = inlined_call_operand.hbm [shape: f32[2,8,32], index: 5, kind: output, shape index: {0}]   ;;  %s3615_s6 = inlined_call_operand.hbm [shape: f32[2,4,8,8], index: 6, kind: output, shape index: {1}]  }
   0x1   :  { %v3221_v0 = vld [vmem:[%s3609_s0] sm:$0xff]  ;;  %v3226_v1 = vld [vmem:[%s3609_s0 + $0x8] sm:$0xff] }
   0x2   :  { %v26_v2 = vmul.f32 %v3221_v0, %v3221_v0  ;;  %v27_v3 = vmul.f32 %v3226_v1, %v3226_v1 }
   0x3   :  { %13 = vsyncpa [#allocation5], 0  ;;  %v56_v6 = vld [vmem:[%s3611_s2 + $0x18] sm:$0xff]  ;;  %v55_v8 = vld [vmem:[%s3611_s2 + $0x10] sm:$0xff]  ;;  %vm3178_vm1 = vmmov 0   ;;  %vm1007_vm2 = vcmask 64512  }
   0x4   :  { %v29_v4 = vsel %vm28_vm0, %v26_v2, 0.0  ;;  %v32_v5 = vsel %vm28_vm0, %v27_v3, 0.0  ;;  %v60_v7 = vld [vmem:[%s3611_s2 + $0x38] sm:$0xff]  ;;  %2859 = vmatprep.subr.mxu0 %v56_v6  ;;  %v59_v9 = vld [vmem:[%s3611_s2 + $0x30] sm:$0xff]  ;;  %v54_v10 = vld [vmem:[%s3611_s2 + $0x8] sm:$0xff] }
   0x5   :  { %30 = vadd.xlane.f32.xlu0 %v29_v4  ;;  %2870 = vmatprep.subr.mxu1 %v60_v7  ;;  %v58_v11 = vld [vmem:[%s3611_s2 + $0x28] sm:$0xff]  ;;  %v53_v12 = vld [vmem:[%s3611_s2] sm:$0xff]  ;;  %v64_v14 = vld [vmem:[%s3611_s2 + $0x58] sm:$0xff] }
   0x6   :  { %2860 = vmatpush3.msra.mxu0 %v56_v6  ;;  %2871 = vmatpush3.msra.mxu1 %v60_v7  ;;  %v57_v13 = vld [vmem:[%s3611_s2 + $0x20] sm:$0xff]  ;;  %v68_v15 = vld [vmem:[%s3611_s2 + $0x78] sm:$0xff]  ;;  %v63_v29 = vld [vmem:[%s3611_s2 + $0x50] sm:$0xff] }
   0x7   :  { %2861 = vmatprep.subr.mxu0 %v55_v8  ;;  %2872 = vmatprep.subr.mxu1 %v59_v9  ;;  %v2686_v23 = vld [vmem:[%s3610_s1] ss:$0 sm:$0xff]  ;;  %v67_v30 = vld [vmem:[%s3611_s2 + $0x70] sm:$0xff]  ;;  %v62_v31 = vld [vmem:[%s3611_s2 + $0x48] sm:$0xff] }
   0x8   :  { %2862 = vmatpush3.msra.mxu0 %v55_v8  ;;  %2873 = vmatpush3.msra.mxu1 %v59_v9  ;;  %v66_v32 = vld [vmem:[%s3611_s2 + $0x68] sm:$0xff]  ;;  %v61_v33 = vld [vmem:[%s3611_s2 + $0x40] sm:$0xff]  ;;  %v72_v35 = vld [vmem:[%s3611_s2 + $0x98] sm:$0xff] }
   0x9   :  { %33 = vadd.xlane.f32.xlu0 %v32_v5  ;;  %2863 = vmatprep.subr.mxu0 %v54_v10  ;;  %v65_v34 = vld [vmem:[%s3611_s2 + $0x60] sm:$0xff]  ;;  %v76_v36 = vld [vmem:[%s3611_s2 + $0xb8] sm:$0xff]  ;;  %v71_v37 = vld [vmem:[%s3611_s2 + $0x90] sm:$0xff]  ;;  %v3177_v5 = vmov 0.0  }
   0xa   :  { %2874 = vmatprep.subr.mxu1 %v58_v11  ;;  %2864 = vmatpush3.msra.mxu0 %v54_v10  ;;  %v75_v38 = vld [vmem:[%s3611_s2 + $0xb0] sm:$0xff]  ;;  %v70_v39 = vld [vmem:[%s3611_s2 + $0x88] sm:$0xff]  ;;  %v69_v41 = vld [vmem:[%s3611_s2 + $0x80] sm:$0xff] }
   0xb   :  { %2875 = vmatpush3.msra.mxu1 %v58_v11  ;;  %2865 = vmatprep.subr.mxu0 %v53_v12  ;;  %v74_v40 = vld [vmem:[%s3611_s2 + $0xa8] sm:$0xff]  ;;  %v73_v42 = vld [vmem:[%s3611_s2 + $0xa0] sm:$0xff]  ;;  %v80_v43 = vld [vmem:[%s3611_s2 + $0xd8] sm:$0xff] }
   0xc   :  { %2876 = vmatprep.subr.mxu1 %v57_v13  ;;  %2866 = vmatpush3.msra.mxu0 %v53_v12  ;;  %v84_v44 = vld [vmem:[%s3611_s2 + $0xf8] sm:$0xff]  ;;  %v79_v45 = vld [vmem:[%s3611_s2 + $0xd0] sm:$0xff]  ;;  %v78_v47 = vld [vmem:[%s3611_s2 + $0xc8] sm:$0xff] }
   0xd   :  { %2877 = vmatpush3.msra.mxu1 %v57_v13  ;;  %2881 = vmatprep.subr.mxu0 %v64_v14  ;;  %v83_v46 = vld [vmem:[%s3611_s2 + $0xf0] sm:$0xff]  ;;  %v82_v48 = vld [vmem:[%s3611_s2 + $0xe8] sm:$0xff]  ;;  %v77_v49 = vld [vmem:[%s3611_s2 + $0xc0] sm:$0xff] }
   0xe   :  { %2892 = vmatprep.subr.mxu1 %v68_v15  ;;  %v81_v50 = vld [vmem:[%s3611_s2 + $0xe0] sm:$0xff]  ;;  %v88_v51 = vld [vmem:[%s3611_s2 + $0x118] sm:$0xff]  ;;  %v87_v53 = vld [vmem:[%s3611_s2 + $0x110] sm:$0xff] }
   0xf   :  { %v92_v52 = vld [vmem:[%s3611_s2 + $0x138] sm:$0xff]  ;;  %v91_v54 = vld [vmem:[%s3611_s2 + $0x130] sm:$0xff]  ;;  %v86_v55 = vld [vmem:[%s3611_s2 + $0x108] sm:$0xff] }
  0x10   :  { %v90_v56 = vld [vmem:[%s3611_s2 + $0x128] sm:$0xff]  ;;  %v85_v57 = vld [vmem:[%s3611_s2 + $0x100] sm:$0xff]  ;;  %v96_v59 = vld [vmem:[%s3611_s2 + $0x158] sm:$0xff] }
  0x11   :  { %v89_v58 = vld [vmem:[%s3611_s2 + $0x120] sm:$0xff]  ;;  %v100_v60 = vld [vmem:[%s3611_s2 + $0x178] sm:$0xff]  ;;  %v95_v61 = vld [vmem:[%s3611_s2 + $0x150] sm:$0xff] }
  0x12   :  { %v99_v62 = vld [vmem:[%s3611_s2 + $0x170] sm:$0xff]  ;;  %v94_v63 = vld [vmem:[%s3611_s2 + $0x148] sm:$0xff]  ;;  %v93_v3 = vld [vmem:[%s3611_s2 + $0x140] sm:$0xff] }
  0x13   :  { %v98_v2 = vld [vmem:[%s3611_s2 + $0x168] sm:$0xff]  ;;  %v97_v4 = vld [vmem:[%s3611_s2 + $0x160] sm:$0xff] }
  0x8e   :  { %v31_v16 = vpop.xlane.xlu0 %30 }
  0x8f   :  { %v36_v17 = vmul.f32 0.03125, %v31_v16 }
  0x91   :  { %v38_v18 = vadd.f32 1e-06, %v36_v17 }
  0x92   :  { %v34_v19 = vpop.xlane.xlu0 %33 }
  0x93   :  { %3097 = vrsqrt.f32 %v38_v18  ;;  %v37_v20 = vmul.f32 0.03125, %v34_v19 }
  0x95   :  { %v39_v21 = vadd.f32 1e-06, %v37_v20 }
  0x97   :  { %3099 = vrsqrt.f32 %v39_v21 }
  0xa0   :  { %v3098_v22 = vpop.eup %3097 }
  0xa1   :  { %v42_v24 = vmul.f32 %v3098_v22, %v3221_v0 }
  0xa3   :  { %v3268_v25 = vmul.f32 %v2686_v23, %v42_v24 }
  0xa4   :  { %v3100_v26 = vpop.eup %3099 }
  0xa5   :  { %v43_v27 = vmul.f32 %v3100_v26, %v3226_v1  ;;  %2867 = vmatprep.mubr.msk.f32.mxu0 %vm28_vm0, %v3268_v25  ;;  %2878 = vmatprep.mubr.msk.f32.mxu1 %vm28_vm0, %v3268_v25 }
  0xa7   :  { %v3275_v28 = vmul.f32 %v2686_v23, %v43_v27 }
  0xa9   :  { %2868 = vmatmul.mubr.msk.f32.vlgmr.msra.gmra.mxu0 %vm28_vm0, %v3275_v28  ;;  %2879 = vmatmul.mubr.msk.f32.vlgmr.msra.gmra.mxu1 %vm28_vm0, %v3275_v28 }
  0xaa   :  { %2882 = vmatpush3.msra.mxu0 %v64_v14  ;;  %2893 = vmatpush3.msra.mxu1 %v68_v15 }
  0xab   :  { %2883 = vmatprep.subr.mxu0 %v63_v29  ;;  %2889 = vmatprep.mubr.msk.f32.mxu0 %vm28_vm0, %v3268_v25 }
  0xac   :  { %2894 = vmatprep.subr.mxu1 %v67_v30  ;;  %2900 = vmatprep.mubr.msk.f32.mxu1 %vm28_vm0, %v3268_v25 }
  0xad   :  { %2884 = vmatpush3.msra.mxu0 %v63_v29  ;;  %2895 = vmatpush3.msra.mxu1 %v67_v30 }
  0xae   :  { %2885 = vmatprep.subr.mxu0 %v62_v31  ;;  %2896 = vmatprep.subr.mxu1 %v66_v32 }
  0xaf   :  { %2886 = vmatpush3.msra.mxu0 %v62_v31  ;;  %2897 = vmatpush3.msra.mxu1 %v66_v32  ;;  %v1616_v31 = vld [vmem:[%s3613_s4] sm:$0xff] }
  0xb0   :  { %2887 = vmatprep.subr.mxu0 %v61_v33  ;;  %2898 = vmatprep.subr.mxu1 %v65_v34 }
  0xb1   :  { %2888 = vmatpush3.msra.mxu0 %v61_v33  ;;  %2899 = vmatpush3.msra.mxu1 %v65_v34 }
  0xb2   :  { %2890 = vmatmul.mubr.msk.f32.vlgmr.msra.gmra.mxu0 %vm28_vm0, %v3275_v28  ;;  %2901 = vmatmul.mubr.msk.f32.vlgmr.msra.gmra.mxu1 %vm28_vm0, %v3275_v28 }
  0xb3   :  { %2903 = vmatprep.subr.mxu0 %v72_v35  ;;  %2914 = vmatprep.subr.mxu1 %v76_v36 }
  0xb4   :  { %2904 = vmatpush3.msra.mxu0 %v72_v35  ;;  %2911 = vmatprep.mubr.msk.f32.mxu0 %vm28_vm0, %v3268_v25 }
  0xb5   :  { %2915 = vmatpush3.msra.mxu1 %v76_v36  ;;  %2922 = vmatprep.mubr.msk.f32.mxu1 %vm28_vm0, %v3268_v25 }
  0xb6   :  { %2905 = vmatprep.subr.mxu0 %v71_v37  ;;  %2916 = vmatprep.subr.mxu1 %v75_v38 }
  0xb7   :  { %2906 = vmatpush3.msra.mxu0 %v71_v37  ;;  %2917 = vmatpush3.msra.mxu1 %v75_v38 }
  0xb8   :  { %2907 = vmatprep.subr.mxu0 %v70_v39  ;;  %2918 = vmatprep.subr.mxu1 %v74_v40 }
  0xb9   :  { %2908 = vmatpush3.msra.mxu0 %v70_v39  ;;  %2919 = vmatpush3.msra.mxu1 %v74_v40  ;;  %v1617_v39 = vld [vmem:[%s3613_s4 + $0x8] sm:$0xff] }
  0xba   :  { %2909 = vmatprep.subr.mxu0 %v69_v41  ;;  %2920 = vmatprep.subr.mxu1 %v73_v42 }
  0xbb   :  { %2910 = vmatpush3.msra.mxu0 %v69_v41  ;;  %2921 = vmatpush3.msra.mxu1 %v73_v42 }
  0xbc   :  { %2912 = vmatmul.mubr.msk.f32.vlgmr.msra.gmra.mxu0 %vm28_vm0, %v3275_v28  ;;  %2923 = vmatmul.mubr.msk.f32.vlgmr.msra.gmra.mxu1 %vm28_vm0, %v3275_v28 }
  0xbd   :  { %2925 = vmatprep.subr.mxu0 %v80_v43  ;;  %2936 = vmatprep.subr.mxu1 %v84_v44 }
  0xbe   :  { %2926 = vmatpush3.msra.mxu0 %v80_v43  ;;  %2933 = vmatprep.mubr.msk.f32.mxu0 %vm28_vm0, %v3268_v25 }
  0xbf   :  { %2937 = vmatpush3.msra.mxu1 %v84_v44  ;;  %2944 = vmatprep.mubr.msk.f32.mxu1 %vm28_vm0, %v3268_v25 }
  0xc0   :  { %2927 = vmatprep.subr.mxu0 %v79_v45  ;;  %2938 = vmatprep.subr.mxu1 %v83_v46 }
  0xc1   :  { %2928 = vmatpush3.msra.mxu0 %v79_v45  ;;  %2939 = vmatpush3.msra.mxu1 %v83_v46 }
  0xc2   :  { %2929 = vmatprep.subr.mxu0 %v78_v47  ;;  %2940 = vmatprep.subr.mxu1 %v82_v48 }
  0xc3   :  { %2930 = vmatpush3.msra.mxu0 %v78_v47  ;;  %2941 = vmatpush3.msra.mxu1 %v82_v48  ;;  %v1618_v48 = vld [vmem:[%s3613_s4 + $0x10] sm:$0xff] }
  0xc4   :  { %2931 = vmatprep.subr.mxu0 %v77_v49  ;;  %2942 = vmatprep.subr.mxu1 %v81_v50 }
  0xc5   :  { %2932 = vmatpush3.msra.mxu0 %v77_v49  ;;  %2943 = vmatpush3.msra.mxu1 %v81_v50 }
  0xc6   :  { %2934 = vmatmul.mubr.msk.f32.vlgmr.msra.gmra.mxu0 %vm28_vm0, %v3275_v28  ;;  %2945 = vmatmul.mubr.msk.f32.vlgmr.msra.gmra.mxu1 %vm28_vm0, %v3275_v28 }
  0xc7   :  { %2947 = vmatprep.subr.mxu0 %v88_v51  ;;  %2958 = vmatprep.subr.mxu1 %v92_v52 }
  0xc8   :  { %2948 = vmatpush3.msra.mxu0 %v88_v51  ;;  %2955 = vmatprep.mubr.msk.f32.mxu0 %vm28_vm0, %v3268_v25 }
  0xc9   :  { %2959 = vmatpush3.msra.mxu1 %v92_v52  ;;  %2966 = vmatprep.mubr.msk.f32.mxu1 %vm28_vm0, %v3268_v25 }
  0xca   :  { %2949 = vmatprep.subr.mxu0 %v87_v53  ;;  %2960 = vmatprep.subr.mxu1 %v91_v54 }
  0xcb   :  { %2950 = vmatpush3.msra.mxu0 %v87_v53  ;;  %2961 = vmatpush3.msra.mxu1 %v91_v54 }
  0xcc   :  { %2951 = vmatprep.subr.mxu0 %v86_v55  ;;  %2962 = vmatprep.subr.mxu1 %v90_v56 }
  0xcd   :  { %2952 = vmatpush3.msra.mxu0 %v86_v55  ;;  %2963 = vmatpush3.msra.mxu1 %v90_v56  ;;  %v1619_v56 = vld [vmem:[%s3613_s4 + $0x18] sm:$0xff] }
  0xce   :  { %2953 = vmatprep.subr.mxu0 %v85_v57  ;;  %2964 = vmatprep.subr.mxu1 %v89_v58 }
  0xcf   :  { %2954 = vmatpush3.msra.mxu0 %v85_v57  ;;  %2965 = vmatpush3.msra.mxu1 %v89_v58 }
  0xd0   :  { %2956 = vmatmul.mubr.msk.f32.vlgmr.msra.gmra.mxu0 %vm28_vm0, %v3275_v28  ;;  %2967 = vmatmul.mubr.msk.f32.vlgmr.msra.gmra.mxu1 %vm28_vm0, %v3275_v28 }
  0xd1   :  { %2969 = vmatprep.subr.mxu0 %v96_v59  ;;  %2980 = vmatprep.subr.mxu1 %v100_v60 }
  0xd2   :  { %2970 = vmatpush3.msra.mxu0 %v96_v59  ;;  %2977 = vmatprep.mubr.msk.f32.mxu0 %vm28_vm0, %v3268_v25 }
  0xd3   :  { %2981 = vmatpush3.msra.mxu1 %v100_v60  ;;  %2988 = vmatprep.mubr.msk.f32.mxu1 %vm28_vm0, %v3268_v25 }
  0xd4   :  { %2971 = vmatprep.subr.mxu0 %v95_v61  ;;  %2982 = vmatprep.subr.mxu1 %v99_v62 }
  0xd5   :  { %2972 = vmatpush3.msra.mxu0 %v95_v61  ;;  %2983 = vmatpush3.msra.mxu1 %v99_v62 }
  0xd6   :  { %2973 = vmatprep.subr.mxu0 %v94_v63  ;;  %2984 = vmatprep.subr.mxu1 %v98_v2 }
  0xd7   :  { %2974 = vmatpush3.msra.mxu0 %v94_v63  ;;  %2985 = vmatpush3.msra.mxu1 %v98_v2 }
  0xd8   :  { %2975 = vmatprep.subr.mxu0 %v93_v3  ;;  %2986 = vmatprep.subr.mxu1 %v97_v4 }
  0xd9   :  { %2976 = vmatpush3.msra.mxu0 %v93_v3  ;;  %2987 = vmatpush3.msra.mxu1 %v97_v4 }
  0xda   :  { %2978 = vmatmul.mubr.msk.f32.vlgmr.msra.gmra.mxu0 %vm28_vm0, %v3275_v28  ;;  %2989 = vmatmul.mubr.msk.f32.vlgmr.msra.gmra.mxu1 %vm28_vm0, %v3275_v28 }
  0xdb   :  { %2996 = vmatprep.subr.mxu1 %v3177_v5  ;;  %2991 = vmatprep.subr.mxu0 %v3177_v5 }
  0xdc   :  { %2998 = vmatprep.mubr.msk.f32.mxu1 %vm3178_vm1, %v3177_v5  ;;  %2993 = vmatprep.mubr.msk.f32.mxu0 %vm3178_vm1, %v3177_v5 }
 0x169   :  { %v2869_v6 = vpop.f32.mrf.mxu0  ;;  %v2880_v7 = vpop.f32.mrf.mxu1 }
 0x16b   :  { %v173_v8 = vpop.f32.mrf.mxu0  ;;  %v248_v9 = vpop.f32.mrf.mxu1 }
 0x172   :  { %v2891_v10 = vpop.f32.mrf.mxu0  ;;  %v2902_v11 = vpop.f32.mrf.mxu1 }
 0x174   :  { %v323_v12 = vpop.f32.mrf.mxu0  ;;  %v398_v13 = vpop.f32.mrf.mxu1 }
 0x17c   :  { %v2913_v14 = vpop.f32.mrf.mxu0  ;;  %v2924_v15 = vpop.f32.mrf.mxu1 }
 0x17d   :  { %2997 = vmatpush3.xpose.msk.msra.mxu1 %vm1007_vm2, %v2913_v14 }
 0x17e   :  { %v473_v16 = vpop.f32.mrf.mxu0  ;;  %3006 = vmatprep.subr.mxu1 %v3177_v5  ;;  %v548_v17 = vpop.f32.mrf.mxu1 }
 0x17f   :  { %2992 = vmatpush3.xpose.msk.msra.mxu0 %vm1007_vm2, %v473_v16 }
 0x180   :  { %2999 = vmatmul.mubr.msk.f32.vlgmr.msra.gmra.mxu1 %vm1007_vm2, %v2869_v6  ;;  %3001 = vmatprep.subr.mxu0 %v3177_v5 }
 0x181   :  { %3007 = vmatpush3.xpose.msk.msra.mxu1 %vm1007_vm2, %v2924_v15  ;;  %3008 = vmatprep.mubr.msk.f32.mxu1 %vm3178_vm1, %v3177_v5 }
 0x182   :  { %2994 = vmatmul.mubr.msk.f32.vlgmr.msra.gmra.mxu0 %vm1007_vm2, %v173_v8  ;;  %3016 = vmatprep.subr.mxu1 %v3177_v5 }
 0x183   :  { %3002 = vmatpush3.xpose.msk.msra.mxu0 %vm1007_vm2, %v548_v17  ;;  %3003 = vmatprep.mubr.msk.f32.mxu0 %vm3178_vm1, %v3177_v5 }
 0x184   :  { %3009 = vmatmul.mubr.msk.f32.vlgmr.msra.gmra.mxu1 %vm1007_vm2, %v2880_v7  ;;  %3011 = vmatprep.subr.mxu0 %v3177_v5 }
 0x185   :  { %3018 = vmatprep.mubr.msk.f32.mxu1 %vm3178_vm1, %v3177_v5 }
 0x186   :  { %v2935_v18 = vpop.f32.mrf.mxu0  ;;  %3004 = vmatmul.mubr.msk.f32.vlgmr.msra.gmra.mxu0 %vm1007_vm2, %v248_v9  ;;  %v2946_v19 = vpop.f32.mrf.mxu1 }
 0x187   :  { %3017 = vmatpush3.xpose.msk.msra.mxu1 %vm1007_vm2, %v2935_v18  ;;  %3013 = vmatprep.mubr.msk.f32.mxu0 %vm3178_vm1, %v3177_v5 }
 0x188   :  { %v623_v20 = vpop.f32.mrf.mxu0  ;;  %3026 = vmatprep.subr.mxu1 %v3177_v5  ;;  %v698_v21 = vpop.f32.mrf.mxu1 }
 0x189   :  { %3012 = vmatpush3.xpose.msk.msra.mxu0 %vm1007_vm2, %v623_v20 }
 0x18a   :  { %3019 = vmatmul.mubr.msk.f32.vlgmr.msra.gmra.mxu1 %vm1007_vm2, %v2891_v10  ;;  %3021 = vmatprep.subr.mxu0 %v3177_v5 }
 0x18b   :  { %3027 = vmatpush3.xpose.msk.msra.mxu1 %vm1007_vm2, %v2946_v19  ;;  %3028 = vmatprep.mubr.msk.f32.mxu1 %vm3178_vm1, %v3177_v5 }
 0x18c   :  { %3014 = vmatmul.mubr.msk.f32.vlgmr.msra.gmra.mxu0 %vm1007_vm2, %v323_v12  ;;  %3036 = vmatprep.subr.mxu1 %v3177_v5 }
 0x18d   :  { %3022 = vmatpush3.xpose.msk.msra.mxu0 %vm1007_vm2, %v698_v21  ;;  %3023 = vmatprep.mubr.msk.f32.mxu0 %vm3178_vm1, %v3177_v5 }
 0x18e   :  { %3029 = vmatmul.mubr.msk.f32.vlgmr.msra.gmra.mxu1 %vm1007_vm2, %v2902_v11  ;;  %3031 = vmatprep.subr.mxu0 %v3177_v5 }
 0x18f   :  { %3038 = vmatprep.mubr.msk.f32.mxu1 %vm3178_vm1, %v3177_v5 }
 0x190   :  { %v2957_v22 = vpop.f32.mrf.mxu0  ;;  %3024 = vmatmul.mubr.msk.f32.vlgmr.msra.gmra.mxu0 %vm1007_vm2, %v398_v13  ;;  %v3483_v24 = vpop.f32.mrf.mxu1 }
 0x191   :  { %3037 = vmatpush3.msra.mxu1 %v2957_v22  ;;  %3033 = vmatprep.mubr.msk.f32.mxu0 %vm3178_vm1, %v3177_v5 }
 0x192   :  { %v773_v23 = vpop.f32.mrf.mxu0  ;;  %3046 = vmatprep.subr.mxu1 %v3177_v5  ;;  %v3485_v25 = vpop.f32.mrf.mxu1 }
 0x193   :  { %3032 = vmatpush3.msra.mxu0 %v773_v23 }
 0x194   :  { %3041 = vmatprep.subr.mxu0 %v3177_v5 }
 0x19a   :  { %v3487_v26 = vpop.f32.mrf.mxu1  ;;  %v3489_v27 = vpop.f32.mrf.mxu0 }
 0x19c   :  { %v3491_v28 = vpop.f32.mrf.mxu1  ;;  %v3493_v29 = vpop.f32.mrf.mxu0 }
 0x240   :  { %v1156_v30 = vpop.f32.mrf.mxu1 }
 0x241   :  { %v1621_v37 = vadd.f32 %v1616_v31, %v1156_v30 }
 0x242   :  { %v1080_v32 = vpop.f32.mrf.mxu0  ;;  %v3000_v33 = vpop.f32.mrf.mxu1 }
 0x243   :  { %v1620_v34 = vadd.f32 %v1616_v31, %v1080_v32  ;;  %v1631_v45 = vsel %vm1007_vm2, %v1621_v37, -inf }
 0x244   :  { %v2995_v35 = vpop.f32.mrf.mxu0  ;;  %v1308_v36 = vpop.f32.mrf.mxu1 }
 0x245   :  { %v1628_v38 = vsel %vm1007_vm2, %v1620_v34, -inf  ;;  %v1623_v44 = vadd.f32 %v1617_v39, %v1308_v36 }
 0x246   :  { %v3010_v40 = vpop.f32.mrf.mxu1  ;;  %1629 = vmax.xlane.f32.xlu1 %v1628_v38  ;;  %v1232_v41 = vpop.f32.mrf.mxu0 }
 0x247   :  { %v1622_v42 = vadd.f32 %v1617_v39, %v1232_v41  ;;  %v1637_v53 = vsel %vm1007_vm2, %v1623_v44, -inf }
 0x248   :  { %v3005_v43 = vpop.f32.mrf.mxu0 }
 0x249   :  { %v1634_v46 = vsel %vm1007_vm2, %v1622_v42, -inf }
 0x24a   :  { %v1460_v47 = vpop.f32.mrf.mxu1  ;;  %1632 = vmax.xlane.f32.xlu1 %v1631_v45  ;;  %1635 = vmax.xlane.f32.xlu0 %v1634_v46 }
 0x24b   :  { %v1625_v51 = vadd.f32 %v1618_v48, %v1460_v47 }
 0x24c   :  { %v3020_v49 = vpop.f32.mrf.mxu1  ;;  %v1384_v50 = vpop.f32.mrf.mxu0 }
 0x24d   :  { %v1624_v52 = vadd.f32 %v1618_v48, %v1384_v50  ;;  %v1643_v62 = vsel %vm1007_vm2, %v1625_v51, -inf }
 0x24e   :  { %v3015_v54 = vpop.f32.mrf.mxu0  ;;  %v1612_v55 = vpop.f32.mrf.mxu1  ;;  %1638 = vmax.xlane.f32.xlu1 %v1637_v53 }
 0x24f   :  { %v1640_v57 = vsel %vm1007_vm2, %v1624_v52, -inf  ;;  %v1627_v60 = vadd.f32 %v1619_v56, %v1612_v55 }
 0x250   :  { %v3030_v58 = vpop.f32.mrf.mxu1  ;;  %1641 = vmax.xlane.f32.xlu0 %v1640_v57  ;;  %v1536_v59 = vpop.f32.mrf.mxu0 }
 0x251   :  { %v1626_v61 = vadd.f32 %v1619_v56, %v1536_v59  ;;  %v1649_v3 = vsel %vm1007_vm2, %v1627_v60, -inf }
 0x252   :  { %v3025_v63 = vpop.f32.mrf.mxu0  ;;  %1644 = vmax.xlane.f32.xlu1 %v1643_v62 }
 0x253   :  { %v1646_v2 = vsel %vm1007_vm2, %v1626_v61, -inf }
 0x254   :  { %1647 = vmax.xlane.f32.xlu0 %v1646_v2 }
 0x256   :  { %1650 = vmax.xlane.f32.xlu1 %v1649_v3 }
 0x2cf   :  { %v1630_v4 = vpop.xlane.xlu1 %1629 }
 0x2d0   :  { %v1652_v6 = vsub.f32 %v1620_v34, %v1630_v4 }
 0x2d2   :  { %v1660_v7 = vmul.f32 1.442695, %v1652_v6 }
 0x2d3   :  { %v1633_v8 = vpop.xlane.xlu1 %1632  ;;  %v1636_v9 = vpop.xlane.xlu0 %1635 }
 0x2d4   :  { %3101 = vpow2.f32 %v1660_v7  ;;  %v1653_v10 = vsub.f32 %v1621_v37, %v1633_v8  ;;  %v1654_v11 = vsub.f32 %v1622_v42, %v1636_v9  ;;  %v2308_v9 = vld [vmem:[%s3612_s3] sm:$0xff] }
 0x2d6   :  { %v1662_v12 = vmul.f32 1.442695, %v1653_v10  ;;  %v1664_v13 = vmul.f32 1.442695, %v1654_v11  ;;  %v2311_v10 = vld [vmem:[%s3612_s3 + $0x18] sm:$0xff] }
 0x2d7   :  { %v1639_v14 = vpop.xlane.xlu1 %1638 }
 0x2d8   :  { %3103 = vpow2.f32 %v1662_v12  ;;  %v1655_v15 = vsub.f32 %v1623_v44, %v1639_v14 }
 0x2d9   :  { %3105 = vpow2.f32 %v1664_v13  ;;  %v1642_v16 = vpop.xlane.xlu0 %1641 }
 0x2da   :  { %v1666_v17 = vmul.f32 1.442695, %v1655_v15  ;;  %v1656_v18 = vsub.f32 %v1624_v52, %v1642_v16 }
 0x2db   :  { %v1645_v19 = vpop.xlane.xlu1 %1644 }
 0x2dc   :  { %3107 = vpow2.f32 %v1666_v17  ;;  %v1668_v20 = vmul.f32 1.442695, %v1656_v18  ;;  %v1657_v21 = vsub.f32 %v1625_v51, %v1645_v19 }
 0x2dd   :  { %v1648_v22 = vpop.xlane.xlu0 %1647 }
 0x2de   :  { %3109 = vpow2.f32 %v1668_v20  ;;  %v1670_v23 = vmul.f32 1.442695, %v1657_v21  ;;  %v1658_v30 = vsub.f32 %v1626_v61, %v1648_v22 }
 0x2df   :  { %v1651_v31 = vpop.xlane.xlu1 %1650 }
 0x2e0   :  { %3111 = vpow2.f32 %v1670_v23  ;;  %v1672_v32 = vmul.f32 1.442695, %v1658_v30  ;;  %v1659_v33 = vsub.f32 %v1627_v60, %v1651_v31 }
 0x2e1   :  { %v3102_v34 = vpop.eup %3101 }
 0x2e2   :  { %3113 = vpow2.f32 %v1672_v32  ;;  %v1674_v35 = vmul.f32 1.442695, %v1659_v33  ;;  %v1676_v36 = vsel %vm1007_vm2, %v3102_v34, 0.0 }
 0x2e3   :  { %1677 = vadd.xlane.f32.xlu0 %v1676_v36 }
 0x2e4   :  { %3115 = vpow2.f32 %v1674_v35 }
 0x2e5   :  { %v3104_v37 = vpop.eup %3103 }
 0x2e6   :  { %v3106_v38 = vpop.eup %3105  ;;  %v1679_v39 = vsel %vm1007_vm2, %v3104_v37, 0.0 }
 0x2e7   :  { %1680 = vadd.xlane.f32.xlu1 %v1679_v39  ;;  %v1682_v40 = vsel %vm1007_vm2, %v3106_v38, 0.0 }
 0x2e8   :  { %1683 = vadd.xlane.f32.xlu0 %v1682_v40 }
 0x2e9   :  { %v3108_v41 = vpop.eup %3107 }
 0x2ea   :  { %v1685_v42 = vsel %vm1007_vm2, %v3108_v41, 0.0 }
 0x2eb   :  { %v3110_v43 = vpop.eup %3109  ;;  %1686 = vadd.xlane.f32.xlu1 %v1685_v42 }
 0x2ec   :  { %v1688_v44 = vsel %vm1007_vm2, %v3110_v43, 0.0 }
 0x2ed   :  { %v3112_v45 = vpop.eup %3111  ;;  %1689 = vadd.xlane.f32.xlu0 %v1688_v44 }
 0x2ee   :  { %v1691_v46 = vsel %vm1007_vm2, %v3112_v45, 0.0 }
 0x2ef   :  { %v3114_v47 = vpop.eup %3113  ;;  %1692 = vadd.xlane.f32.xlu1 %v1691_v46 }
 0x2f0   :  { %v1694_v48 = vsel %vm1007_vm2, %v3114_v47, 0.0 }
 0x2f1   :  { %v3522_v49 = vpop.eup %3115  ;;  %1695 = vadd.xlane.f32.xlu0 %v1694_v48 }
 0x2f2   :  { %v1697_v50 = vsel %vm1007_vm2, %v3522_v49, 0.0 }
 0x2f3   :  { %1698 = vadd.xlane.f32.xlu1 %v1697_v50 }
 0x36c   :  { %v1678_v51 = vpop.xlane.xlu0 %1677 }
 0x36d   :  { %3117 = vrcp.f32 %v1678_v51 }
 0x370   :  { %v1681_v52 = vpop.xlane.xlu1 %1680 }
 0x371   :  { %3119 = vrcp.f32 %v1681_v52  ;;  %v1684_v53 = vpop.xlane.xlu0 %1683 }
 0x372   :  { %3121 = vrcp.f32 %v1684_v53 }
 0x374   :  { %v1687_v54 = vpop.xlane.xlu1 %1686 }
 0x375   :  { %3123 = vrcp.f32 %v1687_v54 }
 0x376   :  { %v1690_v55 = vpop.xlane.xlu0 %1689 }
 0x377   :  { %3125 = vrcp.f32 %v1690_v55 }
 0x378   :  { %v1693_v56 = vpop.xlane.xlu1 %1692 }
 0x379   :  { %3127 = vrcp.f32 %v1693_v56 }
 0x37a   :  { %v3118_v57 = vpop.eup %3117  ;;  %v1696_v58 = vpop.xlane.xlu0 %1695 }
 0x37b   :  { %3129 = vrcp.f32 %v1696_v58  ;;  %v1708_v59 = vmul.f32 %v3118_v57, %v3102_v34 }
 0x37c   :  { %v1699_v60 = vpop.xlane.xlu1 %1698 }
 0x37d   :  { %3131 = vrcp.f32 %v1699_v60  ;;  %1716 = vst.msk [vmem:[#allocation4] sm:$0xff] %vm1007_vm2, %v1708_v59  ;;  %3034 = vmatmul.mubr.msk.f32.vlgmr.msra.gmra.mxu0 %vm1007_vm2, %v1708_v59 }
 0x37e   :  { %v3120_v61 = vpop.eup %3119  ;;  %3042 = vmatpush3.msra.mxu0 %v3485_v25  ;;  %3043 = vmatprep.mubr.msk.f32.mxu0 %vm3178_vm1, %v3177_v5 }
 0x37f   :  { %v3122_v62 = vpop.eup %3121  ;;  %3051 = vmatprep.subr.mxu0 %v3177_v5  ;;  %v1709_v63 = vmul.f32 %v3120_v61, %v3104_v37 }
 0x380   :  { %v1710_v2 = vmul.f32 %v3122_v62, %v3106_v38 }
 0x381   :  { %1720 = vst.msk [vmem:[#allocation4 + $0x20] sm:$0xff] %vm1007_vm2, %v1709_v63  ;;  %3039 = vmatmul.mubr.msk.f32.vlgmr.msra.gmra.mxu1 %vm1007_vm2, %v1709_v63 }
 0x382   :  { %v3124_v3 = vpop.eup %3123  ;;  %1717 = vst.msk [vmem:[#allocation4 + $0x8] sm:$0xff] %vm1007_vm2, %v1710_v2  ;;  %3044 = vmatmul.mubr.msk.f32.vlgmr.msra.gmra.mxu0 %vm1007_vm2, %v1710_v2  ;;  %3047 = vmatpush3.msra.mxu1 %v3483_v24 }
 0x383   :  { %3052 = vmatpush3.msra.mxu0 %v3493_v29  ;;  %3048 = vmatprep.mubr.msk.f32.mxu1 %vm3178_vm1, %v3177_v5  ;;  %v1711_v25 = vmul.f32 %v3124_v3, %v3108_v41 }
 0x384   :  { %v3126_v4 = vpop.eup %3125  ;;  %3053 = vmatprep.mubr.msk.f32.mxu0 %vm3178_vm1, %v3177_v5  ;;  %3056 = vmatprep.subr.mxu1 %v3177_v5 }
 0x385   :  { %3061 = vmatprep.subr.mxu0 %v3177_v5  ;;  %1721 = vst.msk [vmem:[#allocation4 + $0x28] sm:$0xff] %vm1007_vm2, %v1711_v25  ;;  %3049 = vmatmul.mubr.msk.f32.vlgmr.msra.gmra.mxu1 %vm1007_vm2, %v1711_v25  ;;  %v1712_v6 = vmul.f32 %v3126_v4, %v3110_v43 }
 0x386   :  { %v3128_v24 = vpop.eup %3127  ;;  %3057 = vmatpush3.msra.mxu1 %v3489_v27  ;;  %3058 = vmatprep.mubr.msk.f32.mxu1 %vm3178_vm1, %v3177_v5 }
 0x387   :  { %1718 = vst.msk [vmem:[#allocation4 + $0x10] sm:$0xff] %vm1007_vm2, %v1712_v6  ;;  %3054 = vmatmul.mubr.msk.f32.vlgmr.msra.gmra.mxu0 %vm1007_vm2, %v1712_v6  ;;  %3066 = vmatprep.subr.mxu1 %v3177_v5  ;;  %v1713_v29 = vmul.f32 %v3128_v24, %v3112_v45 }
 0x388   :  { %v3130_v7 = vpop.eup %3129  ;;  %3062 = vmatpush3.msra.mxu0 %v3491_v28  ;;  %3063 = vmatprep.mubr.msk.f32.mxu0 %vm3178_vm1, %v3177_v5 }
 0x389   :  { %1722 = vst.msk [vmem:[#allocation4 + $0x30] sm:$0xff] %vm1007_vm2, %v1713_v29  ;;  %3059 = vmatmul.mubr.msk.f32.vlgmr.msra.gmra.mxu1 %vm1007_vm2, %v1713_v29  ;;  %v1714_v27 = vmul.f32 %v3130_v7, %v3114_v47  ;;  %3071 = vmatprep.subr.mxu0 %v2308_v9 }
 0x38a   :  { %v3132_v8 = vpop.eup %3131  ;;  %3067 = vmatpush3.msra.mxu1 %v3487_v26  ;;  %3068 = vmatprep.mubr.msk.f32.mxu1 %vm3178_vm1, %v3177_v5  ;;  %v2309_v5 = vld [vmem:[%s3612_s3 + $0x8] sm:$0xff]  ;;  %v2310_v26 = vld [vmem:[%s3612_s3 + $0x10] sm:$0xff]  ;;  %s3179_s3 = smov [#allocation4]  }
 0x38b   :  { %1719 = vst.msk [vmem:[#allocation4 + $0x18] sm:$0xff] %vm1007_vm2, %v1714_v27  ;;  %3064 = vmatmul.mubr.msk.f32.vlgmr.msra.gmra.mxu0 %vm1007_vm2, %v1714_v27  ;;  %v1715_v28 = vmul.f32 %v3132_v8, %v3522_v49  ;;  %3076 = vmatprep.subr.mxu1 %v2309_v5  ;;  %s2671_s8 = sshll.u32 %s3179_s3, 4  ;;  %s2672_s8 = int_to_ptr.vmem [resolvable:$true] %s2671_s8 }
 0x38c   :  { %3072 = vmatpush3.msra.mxu0 %v2308_v9  ;;  %s3133_s9 = scalar_lea.vmem %s2672_s8, 1024  ;;  %p3138_p1 = scmp.lt.s32.totalorder %s2672_s8, %s2672_s8 }
 0x38d   :  { %1723 = vst.msk [vmem:[#allocation4 + $0x38] sm:$0xff] %vm1007_vm2, %v1715_v28  ;;  %3069 = vmatmul.mubr.msk.f32.vlgmr.msra.gmra.mxu1 %vm1007_vm2, %v1715_v28  ;;  %3081 = vmatprep.subr.mxu0 %v2310_v26  ;;  %p3134_p0 = scmp.ne.s32.totalorder %s2672_s8, %s3133_s9  ;;  %p3139_p2 = scmp.lt.s32.totalorder %s3133_s9, %s3133_s9 }
 0x38e   :  { %3077 = vmatpush3.msra.mxu1 %v2309_v5 }
 0x38f   :  { %3086 = vmatprep.subr.mxu1 %v2311_v10  ;;  %p3140_p3 = por %p3139_p2, %p3138_p1 }
 0x391   :  { %p3141_p4 = pnand %p3140_p3, %p3134_p0 }
 0x43d   :  { %v1793_v11 = vpop.f32.mrf.mxu0 }
 0x43e   :  { %3073 = vmatprep.mubr.msk.f32.mxu0 %vm1007_vm2, %v1793_v11 }
 0x43f   :  { %v3035_v12 = vpop.f32.mrf.mxu0 }
 0x441   :  { %v1866_v13 = vpop.f32.mrf.mxu1 }
 0x442   :  { %v1939_v14 = vpop.f32.mrf.mxu0  ;;  %3074 = vmatmul.mubr.msk.f32.vlgmr.msra.gmra.mxu0 %vm1007_vm2, %v1866_v13 }
 0x443   :  { %3078 = vmatprep.mubr.msk.f32.mxu1 %vm1007_vm2, %v1939_v14  ;;  %v3040_v15 = vpop.f32.mrf.mxu1  ;;  %3082 = vmatpush3.msra.mxu0 %v2310_v26 }
 0x444   :  { %v3045_v16 = vpop.f32.mrf.mxu0 }
 0x445   :  { %v2012_v17 = vpop.f32.mrf.mxu1 }
 0x446   :  { %3079 = vmatmul.mubr.msk.f32.vlgmr.msra.gmra.mxu1 %vm1007_vm2, %v2012_v17 }
 0x447   :  { %v2085_v18 = vpop.f32.mrf.mxu0  ;;  %v3050_v19 = vpop.f32.mrf.mxu1  ;;  %3087 = vmatpush3.msra.mxu1 %v2311_v10 }
 0x448   :  { %3083 = vmatprep.mubr.msk.f32.mxu0 %vm1007_vm2, %v2085_v18 }
 0x449   :  { %v3055_v20 = vpop.f32.mrf.mxu0  ;;  %v2158_v21 = vpop.f32.mrf.mxu1 }
 0x44a   :  { %3084 = vmatmul.mubr.msk.f32.vlgmr.msra.gmra.mxu0 %vm1007_vm2, %v2158_v21 }
 0x44b   :  { %v2231_v22 = vpop.f32.mrf.mxu0  ;;  %v3060_v23 = vpop.f32.mrf.mxu1 }
 0x44c   :  { %3088 = vmatprep.mubr.msk.f32.mxu1 %vm1007_vm2, %v2231_v22 }
 0x44d   :  { %v3065_v30 = vpop.f32.mrf.mxu0  ;;  %v2304_v31 = vpop.f32.mrf.mxu1 }
 0x44e   :  { %3089 = vmatmul.mubr.msk.f32.vlgmr.msra.gmra.mxu1 %vm1007_vm2, %v2304_v31 }
 0x44f   :  { %v3070_v32 = vpop.f32.mrf.mxu1 }
 0x450   :  { %3144 = shalt.err (!%p3141_p4)
}
 0x451   :  { %s3180_s10 = smov 128   ;;  %s3181_s11 = smov 8  }
 0x452   :  { %2677 = dma.vmem_to_hbm [thread:$0]  %s2672_s8, 1024, %s3615_s6, [#allocation5], %s3180_s10, %s3180_s10, %s3181_s11  }
 0x453   :  { %s3182_s6 = smov [#allocation2]  }
 0x454   :  { %s2659_s14 = sshll.u32 %s3182_s6, 4  ;;  %s2660_s14 = int_to_ptr.vmem [resolvable:$true] %s2659_s14 }
 0x455   :  { %s3153_s15 = scalar_lea.vmem %s2660_s14, 256  ;;  %p3158_p6 = scmp.lt.s32.totalorder %s2660_s14, %s2660_s14 }
 0x456   :  { %p3154_p5 = scmp.ne.s32.totalorder %s2660_s14, %s3153_s15  ;;  %p3159_p7 = scmp.lt.s32.totalorder %s3153_s15, %s3153_s15 }
 0x458   :  { %p3160_p8 = por %p3159_p7, %p3158_p6 }
 0x45a   :  { %p3161_p9 = pnand %p3160_p8, %p3154_p5 }
 0x502   :  { %v3075_v33 = vpop.f32.mrf.mxu0 }
 0x503   :  { %v2643_v39 = vsel %vm28_vm0, %v3075_v33, 0.0 }
 0x504   :  { %v2384_v35 = vpop.f32.mrf.mxu0 }
 0x505   :  { %v2636_v44 = vsel %vm28_vm0, %v2384_v35, 0.0 }
 0x506   :  { %v3080_v34 = vpop.f32.mrf.mxu1 }
 0x507   :  { %v2644_v37 = vsel %vm28_vm0, %v3080_v34, 0.0 }
 0x508   :  { %v2465_v36 = vpop.f32.mrf.mxu1  ;;  %v2645_v42 = vadd.f32 %v2644_v37, %v2643_v39 }
 0x509   :  { %v2637_v40 = vsel %vm28_vm0, %v2465_v36, 0.0 }
 0x50a   :  { %v3085_v38 = vpop.f32.mrf.mxu0  ;;  %v2638_v46 = vadd.f32 %v2637_v40, %v2636_v44 }
 0x50b   :  { %v2646_v41 = vsel %vm28_vm0, %v3085_v38, 0.0 }
 0x50c   :  { %v2546_v43 = vpop.f32.mrf.mxu0  ;;  %v2647_v47 = vadd.f32 %v2646_v41, %v2645_v42 }
 0x50d   :  { %v2639_v45 = vsel %vm28_vm0, %v2546_v43, 0.0 }
 0x50e   :  { %v3090_v48 = vpop.f32.mrf.mxu1  ;;  %v2640_v50 = vadd.f32 %v2639_v45, %v2638_v46 }
 0x50f   :  { %v2648_v49 = vsel %vm28_vm0, %v3090_v48, 0.0 }
 0x510   :  { %v2649_v51 = vadd.f32 %v2648_v49, %v2647_v47  ;;  %v2627_v52 = vpop.f32.mrf.mxu1 }
 0x511   :  { %v2641_v53 = vsel %vm28_vm0, %v2627_v52, 0.0 }
 0x512   :  { %v2651_v54 = vadd.f32 %v2649_v51, %v3226_v1  ;;  %v2642_v55 = vadd.f32 %v2641_v53, %v2640_v50 }
 0x514   :  { %2653 = vst.msk [vmem:[#allocation2 + $0x8] sm:$0xff] %vm28_vm0, %v2651_v54  ;;  %v2650_v56 = vadd.f32 %v2642_v55, %v3221_v0 }
 0x516   :  { %2652 = vst.msk [vmem:[#allocation2] sm:$0xff] %vm28_vm0, %v2650_v56 }
 0x517   :  { %3164 = shalt.err (!%p3161_p9)
}
 0x518   :  { %2665 = dma.vmem_to_hbm [thread:$0]  %s2660_s14, 256, %s3614_s5, [#allocation3], %s3180_s10, %s3180_s10, %s3181_s11  }
 0x519   :  { %3173 = dma.done.wait [#allocation3], 256  }
 0x51a   :  { %3174 = vsyncadd [#allocation3], 4294967040 }
 0x51b   :  { %3175 = dma.done.wait [#allocation5], 1024  }
 0x51c   :  { %3176 = vsyncadd [#allocation5], 4294966272 }
 0x51d   :  { %2684 = vsyncpa [#allocation3], 1 }
 0x51e   :  { %2685 = vsyncpa [#allocation5], 1 }

</bundles_post_ra>
